<compile_context>
chip_gen: v6e
topology: v6e:2x2x1
jax: 0.10.0
libtpu: 0.0.40
codegen_flags: <defaults>
</compile_context>

<pallas_src>
import jax
import jax.numpy as jnp
from jax.experimental import pallas as pl
from jax.experimental.pallas import tpu as pltpu


def _lstm_encoder_kernel(x_ref, wih_ref, whh_ref, b_ref, h_out_ref, xproj_ref):
    """Whole sequence in one kernel invocation.

    x_ref     : (T*Bp, F)   time-major, batch-padded input rows
    wih_ref   : (F, 4H)     W_ih^T
    whh_ref   : (H, 4H)     W_hh^T
    b_ref     : (1, 4H)     b_ih + b_hh
    h_out_ref : (Bp, H)     final hidden state (== dropout(h_n) in eval mode)
    xproj_ref : (T*Bp, 4H)  VMEM scratch for the hoisted input projection
    """
    H4 = wih_ref.shape[1]
    H = whh_ref.shape[0]
    Bp = h_out_ref.shape[0]
    T = x_ref.shape[0] // Bp

    # ---- Phase 1: hoisted input projection (one MXU-friendly matmul) ----
    xproj_ref[...] = (
        jnp.dot(x_ref[...], wih_ref[...], preferred_element_type=jnp.float32)
        + b_ref[...]
    )

    # Recurrent weight stays resident in vregs across the whole loop.
    whh = whh_ref[...]  # (H, 4H)

    # ---- Phase 2: sequential recurrence over time (h/c as loop carries) ----
    def step(t, carry):
        h_prev, c_prev = carry
        row = pl.multiple_of(t * Bp, Bp)
        # gates: (Bp, 4H) in PyTorch gate order i, f, g, o
        gates = xproj_ref[pl.ds(row, Bp), :] + jnp.dot(
            h_prev, whh, preferred_element_type=jnp.float32
        )
        i_g = jax.nn.sigmoid(gates[:, 0 * H:1 * H])
        f_g = jax.nn.sigmoid(gates[:, 1 * H:2 * H])
        g_g = jnp.tanh(gates[:, 2 * H:3 * H])
        o_g = jax.nn.sigmoid(gates[:, 3 * H:4 * H])
        c_new = f_g * c_prev + i_g * g_g
        h_new = o_g * jnp.tanh(c_new)
        return (h_new, c_new)

    h0 = jnp.zeros((Bp, H), jnp.float32)
    c0 = jnp.zeros((Bp, H), jnp.float32)
    h_n, _ = jax.lax.fori_loop(0, T, step, (h0, c0), unroll=True)

    # dropout(h_n) in eval mode == identity
    h_out_ref[...] = h_n.astype(h_out_ref.dtype)


def _lstm_encoder_impl(w, w_ih, w_hh, b_ih, b_hh):
    """
    w     : (B, T, F)  batch_first input, as in nn.LSTM(batch_first=True)
    w_ih  : (4H, F), w_hh : (4H, H), b_ih/b_hh : (4H,)  (PyTorch param shapes)
    returns h_n : (1, B, H)
    """
    B, T, F = w.shape
    H4 = w_ih.shape[0]
    H = H4 // 4

    # Pad batch up to a sublane multiple (8) so matmuls / gate math fill vregs.
    Bp = ((B + 7) // 8) * 8

    # Relayout (fused under jit): time-major, batch-padded, flattened to rows.
    x_tm = jnp.transpose(w, (1, 0, 2)).astype(jnp.float32)        # (T, B, F)
    if Bp != B:
        x_tm = jnp.pad(x_tm, ((0, 0), (0, Bp - B), (0, 0)))
    x_flat = x_tm.reshape(T * Bp, F)                              # (T*Bp, F)

    wih_t = jnp.transpose(w_ih).astype(jnp.float32)               # (F, 4H)
    whh_t = jnp.transpose(w_hh).astype(jnp.float32)               # (H, 4H)
    bias = (b_ih + b_hh).astype(jnp.float32).reshape(1, H4)       # (1, 4H)

    h_n = pl.pallas_call(
        _lstm_encoder_kernel,
        out_shape=jax.ShapeDtypeStruct((Bp, H), jnp.float32),
        grid=(1,),
        in_specs=[
            pl.BlockSpec((T * Bp, F), lambda i: (0, 0)),   # flattened input
            pl.BlockSpec((F, H4), lambda i: (0, 0)),       # W_ih^T
            pl.BlockSpec((H, H4), lambda i: (0, 0)),       # W_hh^T
            pl.BlockSpec((1, H4), lambda i: (0, 0)),       # bias
        ],
        out_specs=pl.BlockSpec((Bp, H), lambda i: (0, 0)),
        scratch_shapes=[
            pltpu.VMEM((T * Bp, H4), jnp.float32),         # hoisted X @ W_ih^T + b
        ],
        compiler_params=pltpu.CompilerParams(
            dimension_semantics=("arbitrary",)),
    )(x_flat, wih_t, whh_t, bias)

    # Drop padded batch rows; (num_layers=1, B, H) matches PyTorch h_n.
    return h_n[None, :B, :]


lstm_encoder = jax.jit(_lstm_encoder_impl)


def _reference_lstm(w, w_ih, w_hh, b_ih, b_hh):
    """Pure-JAX reference (lax.scan) for correctness check."""
    B, T, F = w.shape
    H = w_ih.shape[0] // 4
    wih_t = w_ih.T
    whh_t = w_hh.T
    bias = b_ih + b_hh

    def step(carry, x_t):
        h, c = carry
        gates = x_t @ wih_t + h @ whh_t + bias
        i = jax.nn.sigmoid(gates[:, 0 * H:1 * H])
        f = jax.nn.sigmoid(gates[:, 1 * H:2 * H])
        g = jnp.tanh(gates[:, 2 * H:3 * H])
        o = jax.nn.sigmoid(gates[:, 3 * H:4 * H])
        c = f * c + i * g
        h = o * jnp.tanh(c)
        return (h, c), None

    h0 = jnp.zeros((B, H), jnp.float32)
    c0 = jnp.zeros((B, H), jnp.float32)
    (h_n, _), _ = jax.lax.scan(step, (h0, c0), jnp.transpose(w, (1, 0, 2)))
    return h_n[None, :, :]


if __name__ == "__main__":
    # Small shapes consistent with Encoder(in_size=16, latent_size=32)
    B, T, F, H = 2, 8, 16, 32

    key = jax.random.PRNGKey(0)
    k_x, k1, k2, k3, k4 = jax.random.split(key, 5)

    # Deterministic parameter init, PyTorch-style U(-1/sqrt(H), 1/sqrt(H))
    bound = 1.0 / jnp.sqrt(jnp.float32(H))
    w_ih = jax.random.uniform(k1, (4 * H, F), jnp.float32, -bound, bound)
    w_hh = jax.random.uniform(k2, (4 * H, H), jnp.float32, -bound, bound)
    b_ih = jax.random.uniform(k3, (4 * H,), jnp.float32, -bound, bound)
    b_hh = jax.random.uniform(k4, (4 * H,), jnp.float32, -bound, bound)

    w = jax.random.normal(k_x, (B, T, F), jnp.float32)

    h_n = lstm_encoder(w, w_ih, w_hh, b_ih, b_hh)
    h_n = jax.block_until_ready(h_n)

    h_ref = _reference_lstm(w, w_ih, w_hh, b_ih, b_hh)
    assert h_n.shape == (1, B, H), h_n.shape
    assert jnp.allclose(h_n, h_ref, atol=1e-5, rtol=1e-5), "mismatch vs reference"

    print("KERNEL_OK")
</pallas_src>

<mosaic_0001>
module attributes {stable_mosaic.version = 11 : i64} {
  func.func @_lstm_encoder_kernel(%arg0: i32, %arg1: memref<64x16xf32, #tpu.memory_space<vmem>>, %arg2: memref<16x128xf32, #tpu.memory_space<vmem>>, %arg3: memref<32x128xf32, #tpu.memory_space<vmem>>, %arg4: memref<1x128xf32, #tpu.memory_space<vmem>>, %arg5: memref<8x32xf32, #tpu.memory_space<vmem>>, %arg6: memref<64x128xf32, #tpu.memory_space<vmem>>) attributes {dimension_semantics = [#tpu.dimension_semantics<arbitrary>], iteration_bounds = array<i64: 1>, scalar_prefetch = 0 : i64, scratch_operands = 1 : i64, tpu.core_type = #tpu.core_type<tc>, window_params = [{pipeline_mode = #tpu.pipeline_mode<synchronous>, transform_indices = @transform_0, window_bounds = array<i64: 64, 16>}, {pipeline_mode = #tpu.pipeline_mode<synchronous>, transform_indices = @transform_1, window_bounds = array<i64: 16, 128>}, {pipeline_mode = #tpu.pipeline_mode<synchronous>, transform_indices = @transform_2, window_bounds = array<i64: 32, 128>}, {pipeline_mode = #tpu.pipeline_mode<synchronous>, transform_indices = @transform_3, window_bounds = array<i64: 1, 128>}, {pipeline_mode = #tpu.pipeline_mode<synchronous>, transform_indices = @transform_4, window_bounds = array<i64: 8, 32>}]} {
    %c0 = arith.constant 0 : index
    %c0_0 = arith.constant 0 : index
    %0 = vector.load %arg1[%c0, %c0_0] : memref<64x16xf32, #tpu.memory_space<vmem>>, vector<64x16xf32>
    %c0_1 = arith.constant 0 : index
    %c0_2 = arith.constant 0 : index
    %1 = vector.load %arg2[%c0_1, %c0_2] : memref<16x128xf32, #tpu.memory_space<vmem>>, vector<16x128xf32>
    %cst = arith.constant dense<0.000000e+00> : vector<64x128xf32>
    %2 = tpu.matmul %0, %1, %cst {dimension_numbers = #tpu.dot_dimension_numbers<[1], [0], [0], [1], [0, 0, 1, 1], [], []>} : vector<64x16xf32>, vector<16x128xf32>, vector<64x128xf32> -> vector<64x128xf32>
    %c0_3 = arith.constant 0 : index
    %c0_4 = arith.constant 0 : index
    %3 = vector.load %arg4[%c0_3, %c0_4] : memref<1x128xf32, #tpu.memory_space<vmem>>, vector<1x128xf32>
    %4 = vector.broadcast %3 : vector<1x128xf32> to vector<64x128xf32>
    %5 = arith.addf %2, %4 : vector<64x128xf32>
    %c0_5 = arith.constant 0 : index
    %c0_6 = arith.constant 0 : index
    %6 = vector.load %arg6[%c0_5, %c0_6] : memref<64x128xf32, #tpu.memory_space<vmem>>, vector<64x128xf32>
    tpu.vector_store %arg6[%c0_5, %c0_6], %5 {strides = array<i32>} : memref<64x128xf32, #tpu.memory_space<vmem>>, vector<64x128xf32>,
    %c0_7 = arith.constant 0 : index
    %c0_8 = arith.constant 0 : index
    %7 = vector.load %arg3[%c0_7, %c0_8] : memref<32x128xf32, #tpu.memory_space<vmem>>, vector<32x128xf32>
    %cst_9 = arith.constant 0.000000e+00 : f32
    %8 = vector.broadcast %cst_9 : f32 to vector<8x32xf32>
    %cst_10 = arith.constant 0.000000e+00 : f32
    %9 = vector.broadcast %cst_10 : f32 to vector<8x32xf32>
    %c0_i32 = arith.constant 0 : i32
    %c8_i32 = arith.constant 8 : i32
    %10 = arith.muli %c0_i32, %c8_i32 : i32
    %11 = tpu.assume_multiple %10, 8 : i32
    %12 = arith.index_cast %11 : i32 to index
    %c0_11 = arith.constant 0 : index
    %13 = vector.load %arg6[%12, %c0_11] : memref<64x128xf32, #tpu.memory_space<vmem>>, vector<8x128xf32>
    %cst_12 = arith.constant dense<0.000000e+00> : vector<8x128xf32>
    %14 = tpu.matmul %8, %7, %cst_12 {dimension_numbers = #tpu.dot_dimension_numbers<[1], [0], [0], [1], [0, 0, 1, 1], [], []>} : vector<8x32xf32>, vector<32x128xf32>, vector<8x128xf32> -> vector<8x128xf32>
    %15 = arith.addf %13, %14 : vector<8x128xf32>
    %16 = vector.extract_strided_slice %15 {offsets = [0, 0], sizes = [8, 32], strides = [1, 1]} : vector<8x128xf32> to vector<8x32xf32>
    %17 = arith.negf %16 : vector<8x32xf32>
    %18 = math.exp %17 : vector<8x32xf32>
    %cst_13 = arith.constant 1.000000e+00 : f32
    %19 = vector.broadcast %cst_13 : f32 to vector<8x32xf32>
    %20 = arith.addf %19, %18 : vector<8x32xf32>
    %21 = arith.divf %19, %20 : vector<8x32xf32>
    %22 = vector.extract_strided_slice %15 {offsets = [0, 32], sizes = [8, 32], strides = [1, 1]} : vector<8x128xf32> to vector<8x32xf32>
    %23 = arith.negf %22 : vector<8x32xf32>
    %24 = math.exp %23 : vector<8x32xf32>
    %cst_14 = arith.constant 1.000000e+00 : f32
    %25 = vector.broadcast %cst_14 : f32 to vector<8x32xf32>
    %26 = arith.addf %25, %24 : vector<8x32xf32>
    %27 = arith.divf %25, %26 : vector<8x32xf32>
    %28 = vector.extract_strided_slice %15 {offsets = [0, 64], sizes = [8, 32], strides = [1, 1]} : vector<8x128xf32> to vector<8x32xf32>
    %29 = math.tanh %28 : vector<8x32xf32>
    %30 = vector.extract_strided_slice %15 {offsets = [0, 96], sizes = [8, 32], strides = [1, 1]} : vector<8x128xf32> to vector<8x32xf32>
    %31 = arith.negf %30 : vector<8x32xf32>
    %32 = math.exp %31 : vector<8x32xf32>
    %cst_15 = arith.constant 1.000000e+00 : f32
    %33 = vector.broadcast %cst_15 : f32 to vector<8x32xf32>
    %34 = arith.addf %33, %32 : vector<8x32xf32>
    %35 = arith.divf %33, %34 : vector<8x32xf32>
    %36 = arith.mulf %27, %9 : vector<8x32xf32>
    %37 = arith.mulf %21, %29 : vector<8x32xf32>
    %38 = arith.addf %36, %37 : vector<8x32xf32>
    %39 = math.tanh %38 : vector<8x32xf32>
    %40 = arith.mulf %35, %39 : vector<8x32xf32>
    %c1_i32 = arith.constant 1 : i32
    %c8_i32_16 = arith.constant 8 : i32
    %41 = arith.muli %c1_i32, %c8_i32_16 : i32
    %42 = tpu.assume_multiple %41, 8 : i32
    %43 = arith.index_cast %42 : i32 to index
    %c0_17 = arith.constant 0 : index
    %44 = vector.load %arg6[%43, %c0_17] : memref<64x128xf32, #tpu.memory_space<vmem>>, vector<8x128xf32>
    %cst_18 = arith.constant dense<0.000000e+00> : vector<8x128xf32>
    %45 = tpu.matmul %40, %7, %cst_18 {dimension_numbers = #tpu.dot_dimension_numbers<[1], [0], [0], [1], [0, 0, 1, 1], [], []>} : vector<8x32xf32>, vector<32x128xf32>, vector<8x128xf32> -> vector<8x128xf32>
    %46 = arith.addf %44, %45 : vector<8x128xf32>
    %47 = vector.extract_strided_slice %46 {offsets = [0, 0], sizes = [8, 32], strides = [1, 1]} : vector<8x128xf32> to vector<8x32xf32>
    %48 = arith.negf %47 : vector<8x32xf32>
    %49 = math.exp %48 : vector<8x32xf32>
    %cst_19 = arith.constant 1.000000e+00 : f32
    %50 = vector.broadcast %cst_19 : f32 to vector<8x32xf32>
    %51 = arith.addf %50, %49 : vector<8x32xf32>
    %52 = arith.divf %50, %51 : vector<8x32xf32>
    %53 = vector.extract_strided_slice %46 {offsets = [0, 32], sizes = [8, 32], strides = [1, 1]} : vector<8x128xf32> to vector<8x32xf32>
    %54 = arith.negf %53 : vector<8x32xf32>
    %55 = math.exp %54 : vector<8x32xf32>
    %cst_20 = arith.constant 1.000000e+00 : f32
    %56 = vector.broadcast %cst_20 : f32 to vector<8x32xf32>
    %57 = arith.addf %56, %55 : vector<8x32xf32>
    %58 = arith.divf %56, %57 : vector<8x32xf32>
    %59 = vector.extract_strided_slice %46 {offsets = [0, 64], sizes = [8, 32], strides = [1, 1]} : vector<8x128xf32> to vector<8x32xf32>
    %60 = math.tanh %59 : vector<8x32xf32>
    %61 = vector.extract_strided_slice %46 {offsets = [0, 96], sizes = [8, 32], strides = [1, 1]} : vector<8x128xf32> to vector<8x32xf32>
    %62 = arith.negf %61 : vector<8x32xf32>
    %63 = math.exp %62 : vector<8x32xf32>
    %cst_21 = arith.constant 1.000000e+00 : f32
    %64 = vector.broadcast %cst_21 : f32 to vector<8x32xf32>
    %65 = arith.addf %64, %63 : vector<8x32xf32>
    %66 = arith.divf %64, %65 : vector<8x32xf32>
    %67 = arith.mulf %58, %38 : vector<8x32xf32>
    %68 = arith.mulf %52, %60 : vector<8x32xf32>
    %69 = arith.addf %67, %68 : vector<8x32xf32>
    %70 = math.tanh %69 : vector<8x32xf32>
    %71 = arith.mulf %66, %70 : vector<8x32xf32>
    %c2_i32 = arith.constant 2 : i32
    %c8_i32_22 = arith.constant 8 : i32
    %72 = arith.muli %c2_i32, %c8_i32_22 : i32
    %73 = tpu.assume_multiple %72, 8 : i32
    %74 = arith.index_cast %73 : i32 to index
    %c0_23 = arith.constant 0 : index
    %75 = vector.load %arg6[%74, %c0_23] : memref<64x128xf32, #tpu.memory_space<vmem>>, vector<8x128xf32>
    %cst_24 = arith.constant dense<0.000000e+00> : vector<8x128xf32>
    %76 = tpu.matmul %71, %7, %cst_24 {dimension_numbers = #tpu.dot_dimension_numbers<[1], [0], [0], [1], [0, 0, 1, 1], [], []>} : vector<8x32xf32>, vector<32x128xf32>, vector<8x128xf32> -> vector<8x128xf32>
    %77 = arith.addf %75, %76 : vector<8x128xf32>
    %78 = vector.extract_strided_slice %77 {offsets = [0, 0], sizes = [8, 32], strides = [1, 1]} : vector<8x128xf32> to vector<8x32xf32>
    %79 = arith.negf %78 : vector<8x32xf32>
    %80 = math.exp %79 : vector<8x32xf32>
    %cst_25 = arith.constant 1.000000e+00 : f32
    %81 = vector.broadcast %cst_25 : f32 to vector<8x32xf32>
    %82 = arith.addf %81, %80 : vector<8x32xf32>
    %83 = arith.divf %81, %82 : vector<8x32xf32>
    %84 = vector.extract_strided_slice %77 {offsets = [0, 32], sizes = [8, 32], strides = [1, 1]} : vector<8x128xf32> to vector<8x32xf32>
    %85 = arith.negf %84 : vector<8x32xf32>
    %86 = math.exp %85 : vector<8x32xf32>
    %cst_26 = arith.constant 1.000000e+00 : f32
    %87 = vector.broadcast %cst_26 : f32 to vector<8x32xf32>
    %88 = arith.addf %87, %86 : vector<8x32xf32>
    %89 = arith.divf %87, %88 : vector<8x32xf32>
    %90 = vector.extract_strided_slice %77 {offsets = [0, 64], sizes = [8, 32], strides = [1, 1]} : vector<8x128xf32> to vector<8x32xf32>
    %91 = math.tanh %90 : vector<8x32xf32>
    %92 = vector.extract_strided_slice %77 {offsets = [0, 96], sizes = [8, 32], strides = [1, 1]} : vector<8x128xf32> to vector<8x32xf32>
    %93 = arith.negf %92 : vector<8x32xf32>
    %94 = math.exp %93 : vector<8x32xf32>
    %cst_27 = arith.constant 1.000000e+00 : f32
    %95 = vector.broadcast %cst_27 : f32 to vector<8x32xf32>
    %96 = arith.addf %95, %94 : vector<8x32xf32>
    %97 = arith.divf %95, %96 : vector<8x32xf32>
    %98 = arith.mulf %89, %69 : vector<8x32xf32>
    %99 = arith.mulf %83, %91 : vector<8x32xf32>
    %100 = arith.addf %98, %99 : vector<8x32xf32>
    %101 = math.tanh %100 : vector<8x32xf32>
    %102 = arith.mulf %97, %101 : vector<8x32xf32>
    %c3_i32 = arith.constant 3 : i32
    %c8_i32_28 = arith.constant 8 : i32
    %103 = arith.muli %c3_i32, %c8_i32_28 : i32
    %104 = tpu.assume_multiple %103, 8 : i32
    %105 = arith.index_cast %104 : i32 to index
    %c0_29 = arith.constant 0 : index
    %106 = vector.load %arg6[%105, %c0_29] : memref<64x128xf32, #tpu.memory_space<vmem>>, vector<8x128xf32>
    %cst_30 = arith.constant dense<0.000000e+00> : vector<8x128xf32>
    %107 = tpu.matmul %102, %7, %cst_30 {dimension_numbers = #tpu.dot_dimension_numbers<[1], [0], [0], [1], [0, 0, 1, 1], [], []>} : vector<8x32xf32>, vector<32x128xf32>, vector<8x128xf32> -> vector<8x128xf32>
    %108 = arith.addf %106, %107 : vector<8x128xf32>
    %109 = vector.extract_strided_slice %108 {offsets = [0, 0], sizes = [8, 32], strides = [1, 1]} : vector<8x128xf32> to vector<8x32xf32>
    %110 = arith.negf %109 : vector<8x32xf32>
    %111 = math.exp %110 : vector<8x32xf32>
    %cst_31 = arith.constant 1.000000e+00 : f32
    %112 = vector.broadcast %cst_31 : f32 to vector<8x32xf32>
    %113 = arith.addf %112, %111 : vector<8x32xf32>
    %114 = arith.divf %112, %113 : vector<8x32xf32>
    %115 = vector.extract_strided_slice %108 {offsets = [0, 32], sizes = [8, 32], strides = [1, 1]} : vector<8x128xf32> to vector<8x32xf32>
    %116 = arith.negf %115 : vector<8x32xf32>
    %117 = math.exp %116 : vector<8x32xf32>
    %cst_32 = arith.constant 1.000000e+00 : f32
    %118 = vector.broadcast %cst_32 : f32 to vector<8x32xf32>
    %119 = arith.addf %118, %117 : vector<8x32xf32>
    %120 = arith.divf %118, %119 : vector<8x32xf32>
    %121 = vector.extract_strided_slice %108 {offsets = [0, 64], sizes = [8, 32], strides = [1, 1]} : vector<8x128xf32> to vector<8x32xf32>
    %122 = math.tanh %121 : vector<8x32xf32>
    %123 = vector.extract_strided_slice %108 {offsets = [0, 96], sizes = [8, 32], strides = [1, 1]} : vector<8x128xf32> to vector<8x32xf32>
    %124 = arith.negf %123 : vector<8x32xf32>
    %125 = math.exp %124 : vector<8x32xf32>
    %cst_33 = arith.constant 1.000000e+00 : f32
    %126 = vector.broadcast %cst_33 : f32 to vector<8x32xf32>
    %127 = arith.addf %126, %125 : vector<8x32xf32>
    %128 = arith.divf %126, %127 : vector<8x32xf32>
    %129 = arith.mulf %120, %100 : vector<8x32xf32>
    %130 = arith.mulf %114, %122 : vector<8x32xf32>
    %131 = arith.addf %129, %130 : vector<8x32xf32>
    %132 = math.tanh %131 : vector<8x32xf32>
    %133 = arith.mulf %128, %132 : vector<8x32xf32>
    %c4_i32 = arith.constant 4 : i32
    %c8_i32_34 = arith.constant 8 : i32
    %134 = arith.muli %c4_i32, %c8_i32_34 : i32
    %135 = tpu.assume_multiple %134, 8 : i32
    %136 = arith.index_cast %135 : i32 to index
    %c0_35 = arith.constant 0 : index
    %137 = vector.load %arg6[%136, %c0_35] : memref<64x128xf32, #tpu.memory_space<vmem>>, vector<8x128xf32>
    %cst_36 = arith.constant dense<0.000000e+00> : vector<8x128xf32>
    %138 = tpu.matmul %133, %7, %cst_36 {dimension_numbers = #tpu.dot_dimension_numbers<[1], [0], [0], [1], [0, 0, 1, 1], [], []>} : vector<8x32xf32>, vector<32x128xf32>, vector<8x128xf32> -> vector<8x128xf32>
    %139 = arith.addf %137, %138 : vector<8x128xf32>
    %140 = vector.extract_strided_slice %139 {offsets = [0, 0], sizes = [8, 32], strides = [1, 1]} : vector<8x128xf32> to vector<8x32xf32>
    %141 = arith.negf %140 : vector<8x32xf32>
    %142 = math.exp %141 : vector<8x32xf32>
    %cst_37 = arith.constant 1.000000e+00 : f32
    %143 = vector.broadcast %cst_37 : f32 to vector<8x32xf32>
    %144 = arith.addf %143, %142 : vector<8x32xf32>
    %145 = arith.divf %143, %144 : vector<8x32xf32>
    %146 = vector.extract_strided_slice %139 {offsets = [0, 32], sizes = [8, 32], strides = [1, 1]} : vector<8x128xf32> to vector<8x32xf32>
    %147 = arith.negf %146 : vector<8x32xf32>
    %148 = math.exp %147 : vector<8x32xf32>
    %cst_38 = arith.constant 1.000000e+00 : f32
    %149 = vector.broadcast %cst_38 : f32 to vector<8x32xf32>
    %150 = arith.addf %149, %148 : vector<8x32xf32>
    %151 = arith.divf %149, %150 : vector<8x32xf32>
    %152 = vector.extract_strided_slice %139 {offsets = [0, 64], sizes = [8, 32], strides = [1, 1]} : vector<8x128xf32> to vector<8x32xf32>
    %153 = math.tanh %152 : vector<8x32xf32>
    %154 = vector.extract_strided_slice %139 {offsets = [0, 96], sizes = [8, 32], strides = [1, 1]} : vector<8x128xf32> to vector<8x32xf32>
    %155 = arith.negf %154 : vector<8x32xf32>
    %156 = math.exp %155 : vector<8x32xf32>
    %cst_39 = arith.constant 1.000000e+00 : f32
    %157 = vector.broadcast %cst_39 : f32 to vector<8x32xf32>
    %158 = arith.addf %157, %156 : vector<8x32xf32>
    %159 = arith.divf %157, %158 : vector<8x32xf32>
    %160 = arith.mulf %151, %131 : vector<8x32xf32>
    %161 = arith.mulf %145, %153 : vector<8x32xf32>
    %162 = arith.addf %160, %161 : vector<8x32xf32>
    %163 = math.tanh %162 : vector<8x32xf32>
    %164 = arith.mulf %159, %163 : vector<8x32xf32>
    %c5_i32 = arith.constant 5 : i32
    %c8_i32_40 = arith.constant 8 : i32
    %165 = arith.muli %c5_i32, %c8_i32_40 : i32
    %166 = tpu.assume_multiple %165, 8 : i32
    %167 = arith.index_cast %166 : i32 to index
    %c0_41 = arith.constant 0 : index
    %168 = vector.load %arg6[%167, %c0_41] : memref<64x128xf32, #tpu.memory_space<vmem>>, vector<8x128xf32>
    %cst_42 = arith.constant dense<0.000000e+00> : vector<8x128xf32>
    %169 = tpu.matmul %164, %7, %cst_42 {dimension_numbers = #tpu.dot_dimension_numbers<[1], [0], [0], [1], [0, 0, 1, 1], [], []>} : vector<8x32xf32>, vector<32x128xf32>, vector<8x128xf32> -> vector<8x128xf32>
    %170 = arith.addf %168, %169 : vector<8x128xf32>
    %171 = vector.extract_strided_slice %170 {offsets = [0, 0], sizes = [8, 32], strides = [1, 1]} : vector<8x128xf32> to vector<8x32xf32>
    %172 = arith.negf %171 : vector<8x32xf32>
    %173 = math.exp %172 : vector<8x32xf32>
    %cst_43 = arith.constant 1.000000e+00 : f32
    %174 = vector.broadcast %cst_43 : f32 to vector<8x32xf32>
    %175 = arith.addf %174, %173 : vector<8x32xf32>
    %176 = arith.divf %174, %175 : vector<8x32xf32>
    %177 = vector.extract_strided_slice %170 {offsets = [0, 32], sizes = [8, 32], strides = [1, 1]} : vector<8x128xf32> to vector<8x32xf32>
    %178 = arith.negf %177 : vector<8x32xf32>
    %179 = math.exp %178 : vector<8x32xf32>
    %cst_44 = arith.constant 1.000000e+00 : f32
    %180 = vector.broadcast %cst_44 : f32 to vector<8x32xf32>
    %181 = arith.addf %180, %179 : vector<8x32xf32>
    %182 = arith.divf %180, %181 : vector<8x32xf32>
    %183 = vector.extract_strided_slice %170 {offsets = [0, 64], sizes = [8, 32], strides = [1, 1]} : vector<8x128xf32> to vector<8x32xf32>
    %184 = math.tanh %183 : vector<8x32xf32>
    %185 = vector.extract_strided_slice %170 {offsets = [0, 96], sizes = [8, 32], strides = [1, 1]} : vector<8x128xf32> to vector<8x32xf32>
    %186 = arith.negf %185 : vector<8x32xf32>
    %187 = math.exp %186 : vector<8x32xf32>
    %cst_45 = arith.constant 1.000000e+00 : f32
    %188 = vector.broadcast %cst_45 : f32 to vector<8x32xf32>
    %189 = arith.addf %188, %187 : vector<8x32xf32>
    %190 = arith.divf %188, %189 : vector<8x32xf32>
    %191 = arith.mulf %182, %162 : vector<8x32xf32>
    %192 = arith.mulf %176, %184 : vector<8x32xf32>
    %193 = arith.addf %191, %192 : vector<8x32xf32>
    %194 = math.tanh %193 : vector<8x32xf32>
    %195 = arith.mulf %190, %194 : vector<8x32xf32>
    %c6_i32 = arith.constant 6 : i32
    %c8_i32_46 = arith.constant 8 : i32
    %196 = arith.muli %c6_i32, %c8_i32_46 : i32
    %197 = tpu.assume_multiple %196, 8 : i32
    %198 = arith.index_cast %197 : i32 to index
    %c0_47 = arith.constant 0 : index
    %199 = vector.load %arg6[%198, %c0_47] : memref<64x128xf32, #tpu.memory_space<vmem>>, vector<8x128xf32>
    %cst_48 = arith.constant dense<0.000000e+00> : vector<8x128xf32>
    %200 = tpu.matmul %195, %7, %cst_48 {dimension_numbers = #tpu.dot_dimension_numbers<[1], [0], [0], [1], [0, 0, 1, 1], [], []>} : vector<8x32xf32>, vector<32x128xf32>, vector<8x128xf32> -> vector<8x128xf32>
    %201 = arith.addf %199, %200 : vector<8x128xf32>
    %202 = vector.extract_strided_slice %201 {offsets = [0, 0], sizes = [8, 32], strides = [1, 1]} : vector<8x128xf32> to vector<8x32xf32>
    %203 = arith.negf %202 : vector<8x32xf32>
    %204 = math.exp %203 : vector<8x32xf32>
    %cst_49 = arith.constant 1.000000e+00 : f32
    %205 = vector.broadcast %cst_49 : f32 to vector<8x32xf32>
    %206 = arith.addf %205, %204 : vector<8x32xf32>
    %207 = arith.divf %205, %206 : vector<8x32xf32>
    %208 = vector.extract_strided_slice %201 {offsets = [0, 32], sizes = [8, 32], strides = [1, 1]} : vector<8x128xf32> to vector<8x32xf32>
    %209 = arith.negf %208 : vector<8x32xf32>
    %210 = math.exp %209 : vector<8x32xf32>
    %cst_50 = arith.constant 1.000000e+00 : f32
    %211 = vector.broadcast %cst_50 : f32 to vector<8x32xf32>
    %212 = arith.addf %211, %210 : vector<8x32xf32>
    %213 = arith.divf %211, %212 : vector<8x32xf32>
    %214 = vector.extract_strided_slice %201 {offsets = [0, 64], sizes = [8, 32], strides = [1, 1]} : vector<8x128xf32> to vector<8x32xf32>
    %215 = math.tanh %214 : vector<8x32xf32>
    %216 = vector.extract_strided_slice %201 {offsets = [0, 96], sizes = [8, 32], strides = [1, 1]} : vector<8x128xf32> to vector<8x32xf32>
    %217 = arith.negf %216 : vector<8x32xf32>
    %218 = math.exp %217 : vector<8x32xf32>
    %cst_51 = arith.constant 1.000000e+00 : f32
    %219 = vector.broadcast %cst_51 : f32 to vector<8x32xf32>
    %220 = arith.addf %219, %218 : vector<8x32xf32>
    %221 = arith.divf %219, %220 : vector<8x32xf32>
    %222 = arith.mulf %213, %193 : vector<8x32xf32>
    %223 = arith.mulf %207, %215 : vector<8x32xf32>
    %224 = arith.addf %222, %223 : vector<8x32xf32>
    %225 = math.tanh %224 : vector<8x32xf32>
    %226 = arith.mulf %221, %225 : vector<8x32xf32>
    %c7_i32 = arith.constant 7 : i32
    %c8_i32_52 = arith.constant 8 : i32
    %227 = arith.muli %c7_i32, %c8_i32_52 : i32
    %228 = tpu.assume_multiple %227, 8 : i32
    %229 = arith.index_cast %228 : i32 to index
    %c0_53 = arith.constant 0 : index
    %230 = vector.load %arg6[%229, %c0_53] : memref<64x128xf32, #tpu.memory_space<vmem>>, vector<8x128xf32>
    %cst_54 = arith.constant dense<0.000000e+00> : vector<8x128xf32>
    %231 = tpu.matmul %226, %7, %cst_54 {dimension_numbers = #tpu.dot_dimension_numbers<[1], [0], [0], [1], [0, 0, 1, 1], [], []>} : vector<8x32xf32>, vector<32x128xf32>, vector<8x128xf32> -> vector<8x128xf32>
    %232 = arith.addf %230, %231 : vector<8x128xf32>
    %233 = vector.extract_strided_slice %232 {offsets = [0, 0], sizes = [8, 32], strides = [1, 1]} : vector<8x128xf32> to vector<8x32xf32>
    %234 = arith.negf %233 : vector<8x32xf32>
    %235 = math.exp %234 : vector<8x32xf32>
    %cst_55 = arith.constant 1.000000e+00 : f32
    %236 = vector.broadcast %cst_55 : f32 to vector<8x32xf32>
    %237 = arith.addf %236, %235 : vector<8x32xf32>
    %238 = arith.divf %236, %237 : vector<8x32xf32>
    %239 = vector.extract_strided_slice %232 {offsets = [0, 32], sizes = [8, 32], strides = [1, 1]} : vector<8x128xf32> to vector<8x32xf32>
    %240 = arith.negf %239 : vector<8x32xf32>
    %241 = math.exp %240 : vector<8x32xf32>
    %cst_56 = arith.constant 1.000000e+00 : f32
    %242 = vector.broadcast %cst_56 : f32 to vector<8x32xf32>
    %243 = arith.addf %242, %241 : vector<8x32xf32>
    %244 = arith.divf %242, %243 : vector<8x32xf32>
    %245 = vector.extract_strided_slice %232 {offsets = [0, 64], sizes = [8, 32], strides = [1, 1]} : vector<8x128xf32> to vector<8x32xf32>
    %246 = math.tanh %245 : vector<8x32xf32>
    %247 = vector.extract_strided_slice %232 {offsets = [0, 96], sizes = [8, 32], strides = [1, 1]} : vector<8x128xf32> to vector<8x32xf32>
    %248 = arith.negf %247 : vector<8x32xf32>
    %249 = math.exp %248 : vector<8x32xf32>
    %cst_57 = arith.constant 1.000000e+00 : f32
    %250 = vector.broadcast %cst_57 : f32 to vector<8x32xf32>
    %251 = arith.addf %250, %249 : vector<8x32xf32>
    %252 = arith.divf %250, %251 : vector<8x32xf32>
    %253 = arith.mulf %244, %224 : vector<8x32xf32>
    %254 = arith.mulf %238, %246 : vector<8x32xf32>
    %255 = arith.addf %253, %254 : vector<8x32xf32>
    %256 = math.tanh %255 : vector<8x32xf32>
    %257 = arith.mulf %252, %256 : vector<8x32xf32>
    %c8_i32_58 = arith.constant 8 : i32
    %c0_59 = arith.constant 0 : index
    %c0_60 = arith.constant 0 : index
    %258 = vector.load %arg5[%c0_59, %c0_60] : memref<8x32xf32, #tpu.memory_space<vmem>>, vector<8x32xf32>
    tpu.vector_store %arg5[%c0_59, %c0_60], %257 {strides = array<i32>} : memref<8x32xf32, #tpu.memory_space<vmem>>, vector<8x32xf32>,
    return
  }
  func.func @transform_0(%arg0: i32) -> (i32, i32) {
    %c0_i32 = arith.constant 0 : i32
    %c0_i32_0 = arith.constant 0 : i32
    %c0_i32_1 = arith.constant 0 : i32
    return %c0_i32, %c0_i32_0 : i32, i32
  }
  func.func @transform_1(%arg0: i32) -> (i32, i32) {
    %c0_i32 = arith.constant 0 : i32
    %c0_i32_0 = arith.constant 0 : i32
    %c0_i32_1 = arith.constant 0 : i32
    return %c0_i32, %c0_i32_0 : i32, i32
  }
  func.func @transform_2(%arg0: i32) -> (i32, i32) {
    %c0_i32 = arith.constant 0 : i32
    %c0_i32_0 = arith.constant 0 : i32
    %c0_i32_1 = arith.constant 0 : i32
    return %c0_i32, %c0_i32_0 : i32, i32
  }
  func.func @transform_3(%arg0: i32) -> (i32, i32) {
    %c0_i32 = arith.constant 0 : i32
    %c0_i32_0 = arith.constant 0 : i32
    %c0_i32_1 = arith.constant 0 : i32
    return %c0_i32, %c0_i32_0 : i32, i32
  }
  func.func @transform_4(%arg0: i32) -> (i32, i32) {
    %c0_i32 = arith.constant 0 : i32
    %c0_i32_0 = arith.constant 0 : i32
    %c0_i32_1 = arith.constant 0 : i32
    return %c0_i32, %c0_i32_0 : i32, i32
  }
}

</mosaic_0001>

<bundles_post_ra>
// kernel: _lstm_encoder_impl.1
= control target key start
LH: loop header
LB: loop body
LE: loop exit
PB: predicated region body
PF: predicated region fallthrough
CT: control target
= control target key end

     0   :  { %v1245_v0 = vmov 0.0   ;;  %vm1246_vm0 = vmmov 0   ;;  %vm34_vm1 = vcmask 130048   ;;  %s1247_s5 = smov 64   ;;  %vm177_vm2 = vcmask 261120   ;;  %s1481_s1 = inlined_call_operand.vmem [shape: f32[16,128], index: 1, kind: input, shape index: {}]   ;;  %s1482_s2 = inlined_call_operand.vmem [shape: f32[32,128], index: 2, kind: input, shape index: {}]   ;;  %s1483_s0 = inlined_call_operand.vmem [shape: f32[64,16], index: 0, kind: input, shape index: {}]   ;;  %s1484_s3 = inlined_call_operand.vmem [shape: f32[1,128], index: 3, kind: input, shape index: {}]   ;;  %s1485_s4 = inlined_call_operand.vmem [shape: f32[8,32], index: 4, kind: output, shape index: {}]  }
   0x1   :  { %1089 = vmatprep.subr.mxu1 %v1245_v0  ;;  %v26_v1 = vld [vmem:[%s1481_s1 + $0x8] sm:$0xff]  ;;  %v1281_v2 = vld [vmem:[%s1482_s2 + $0x18] sm:$0xff]  ;;  %v25_v3 = vld [vmem:[%s1481_s1] sm:$0xff]  ;;  %1097 = vmatprep.mubr.msk.f32.mxu1 %vm1246_vm0, %v1245_v0 }
   0x2   :  { %1073 = vmatprep.subr.mxu0 %v26_v1  ;;  %1090 = vmatpush3.msra.mxu1 %v1281_v2  ;;  %v1292_v4 = vld [vmem:[%s1482_s2 + $0x10] sm:$0xff]  ;;  %v17_v5 = vld [vmem:[%s1483_s0] sm:$0xff]  ;;  %v18_v6 = vld [vmem:[%s1483_s0 + $0x8] sm:$0xff] }
   0x3   :  { %1074 = vmatpush3.msra.mxu0 %v26_v1  ;;  %1091 = vmatprep.subr.mxu1 %v1245_v0  ;;  %v1305_v7 = vld [vmem:[%s1482_s2 + $0x8] sm:$0xff]  ;;  %v1313_v8 = vld [vmem:[%s1482_s2] sm:$0xff]  ;;  %v19_v44 = vld [vmem:[%s1483_s0 + $0x10] sm:$0xff] }
   0x4   :  { %1075 = vmatprep.subr.mxu0 %v25_v3  ;;  %1092 = vmatpush3.msra.mxu1 %v1292_v4  ;;  %v1342_v10 = vld [vmem:[%s1484_s3] ss:$0 sm:$0xff]  ;;  %s1248_s3 = smov 32   ;;  %v20_v45 = vld [vmem:[%s1483_s0 + $0x18] sm:$0xff]  ;;  %v22_v47 = vld [vmem:[%s1483_s0 + $0x28] sm:$0xff] }
   0x5   :  { %1076 = vmatpush3.msra.mxu0 %v25_v3  ;;  %1077 = vmatprep.mubr.msk.f32.mxu0 %vm34_vm1, %v17_v5  ;;  %v21_v46 = vld [vmem:[%s1483_s0 + $0x20] sm:$0xff]  ;;  %v23_v48 = vld [vmem:[%s1483_s0 + $0x30] sm:$0xff]  ;;  %v24_v49 = vld [vmem:[%s1483_s0 + $0x38] sm:$0xff] }
   0x6   :  { %1093 = vmatprep.subr.mxu1 %v1245_v0  ;;  %1078 = vmatmul.mubr.msk.f32.vlgmr.msra.gmra.mxu0 %vm34_vm1, %v18_v6 }
   0x7   :  { %1094 = vmatpush3.msra.mxu1 %v1305_v7  ;;  %1111 = vmatprep.subr.mxu0 %v1245_v0 }
   0x8   :  { %1095 = vmatprep.subr.mxu1 %v1245_v0  ;;  %1112 = vmatpush3.msra.mxu0 %v1281_v2 }
   0x9   :  { %1096 = vmatpush3.msra.mxu1 %v1313_v8  ;;  %1113 = vmatprep.subr.mxu0 %v1245_v0 }
   0xa   :  { %1098 = vmatmul.mubr.f32.vlgmr.msra.gmra.mxu1 %v1245_v0  ;;  %1100 = vmatprep.subr.mxu1 %v1245_v0 }
   0xb   :  { %1101 = vmatpush3.msra.mxu1 %v1281_v2  ;;  %1108 = vmatprep.mubr.msk.f32.mxu1 %vm1246_vm0, %v1245_v0 }
   0xc   :  { %1102 = vmatprep.subr.mxu1 %v1245_v0  ;;  %1114 = vmatpush3.msra.mxu0 %v1292_v4 }
   0xd   :  { %1103 = vmatpush3.msra.mxu1 %v1292_v4  ;;  %1115 = vmatprep.subr.mxu0 %v1245_v0 }
   0xe   :  { %1104 = vmatprep.subr.mxu1 %v1245_v0  ;;  %1116 = vmatpush3.msra.mxu0 %v1305_v7 }
   0xf   :  { %1105 = vmatpush3.msra.mxu1 %v1305_v7  ;;  %1117 = vmatprep.subr.mxu0 %v1245_v0 }
  0x10   :  { %1106 = vmatprep.subr.mxu1 %v1245_v0  ;;  %1118 = vmatpush3.msra.mxu0 %v1313_v8 }
  0x11   :  { %1107 = vmatpush3.msra.mxu1 %v1313_v8  ;;  %1133 = vmatprep.subr.mxu0 %v1245_v0 }
  0x12   :  { %1122 = vmatprep.subr.mxu1 %v1245_v0  ;;  %1080 = vmatprep.mubr.msk.f32.mxu0 %vm34_vm1, %v19_v44 }
  0x13   :  { %1081 = vmatmul.mubr.msk.f32.gmra.mxu0 %vm34_vm1, %v20_v45 }
  0x14   :  { %1083 = vmatprep.mubr.msk.f32.mxu0 %vm34_vm1, %v21_v46 }
  0x17   :  { %1084 = vmatmul.mubr.msk.f32.gmra.mxu0 %vm34_vm1, %v22_v47 }
  0x18   :  { %1086 = vmatprep.mubr.msk.f32.mxu0 %vm34_vm1, %v23_v48 }
  0x1b   :  { %1087 = vmatmul.mubr.msk.f32.gmra.mxu0 %vm34_vm1, %v24_v49 }
  0x1c   :  { %1119 = vmatprep.mubr.msk.f32.mxu0 %vm1246_vm0, %v1245_v0 }
  0xc6   :  { %v1079_v9 = vpop.f32.mrf.mxu0 }
  0xc7   :  { %v131_v30 = vadd.f32 %v1079_v9, %v1342_v10 }
  0xc8   :  { %v125_v11 = vpop.f32.mrf.mxu0 }
  0xc9   :  { %v126_v12 = vadd.f32 %v1342_v10, %v125_v11 }
  0xca   :  { %v247_v13 = vpop.f32.mrf.mxu1 }
  0xcb   :  { %v251_v14 = vadd.f32 %v247_v13, %v126_v12 }
  0xcc   :  { %v1099_v15 = vpop.f32.mrf.mxu1 }
  0xcd   :  { %1181 = vtanh.f32 %v251_v14  ;;  %v1008_v17 = vmul.f32 -1.442695, %v251_v14 }
  0xcf   :  { %1183 = vpow2.f32 %v1008_v17 }
  0xd3   :  { %v1082_v54 = vpop.f32.mrf.mxu0 }
  0xd5   :  { %v135_v55 = vpop.f32.mrf.mxu0 }
  0xd6   :  { %v136_v60 = vadd.f32 %v1342_v10, %v135_v55 }
  0xd7   :  { %v1402_v56 = vpop.f32.mrf.mxu0 }
  0xd9   :  { %v1404_v57 = vpop.f32.mrf.mxu0 }
  0xda   :  { %v1182_v16 = vpop.eup %1181 }
  0xdb   :  { %261 = vrot.lane.b32.xlu0 %v1182_v16, %s1247_s5  ;;  %v1406_v58 = vpop.f32.mrf.mxu0 }
  0xdc   :  { %v1184_v18 = vpop.eup %1183 }
  0xdd   :  { %v255_v19 = vadd.f32 1.0, %v1184_v18  ;;  %v1408_v59 = vpop.f32.mrf.mxu0 }
  0xdf   :  { %1185 = vrcp.f32 %v255_v19 }
  0xec   :  { %v1186_v20 = vpop.eup %1185 }
  0xed   :  { %v259_v23 = vmul.f32 0.0, %v1186_v20 }
 0x14d   :  { %v262_v21 = vpop.permute.xlu0 %261 }
 0x14e   :  { %v264_v22 = vmul.f32 %v1186_v20, %v262_v21 }
 0x150   :  { %266 = vrot.lane.b32.xlu0 %v264_v22, %s1248_s3 }
 0x1c2   :  { %v267_v24 = vpop.permute.xlu0 %266 }
 0x1c3   :  { %v269_v25 = vadd.f32 %v267_v24, %v259_v23 }
 0x1c5   :  { %1187 = vtanh.f32 %v269_v25 }
 0x1d2   :  { %v1188_v26 = vpop.eup %1187 }
 0x1d3   :  { %272 = vrot.lane.b32.xlu1 %v1188_v26, %s1247_s5 }
 0x245   :  { %v273_v27 = vpop.permute.xlu1 %272 }
 0x246   :  { %v275_v28 = vmul.f32 %v1186_v20, %v273_v27  ;;  %v141_v20 = vadd.f32 %v1082_v54, %v1342_v10 }
 0x248   :  { %279 = vrot.lane.b32.xlu1 %v275_v28, %s1248_s3 }
 0x2ba   :  { %v280_v29 = vpop.permute.xlu1 %279 }
 0x2bb   :  { %1109 = vmatmul.mubr.msk.f32.vlgmr.msra.gmra.mxu1 %vm177_vm2, %v280_v29 }
 0x2bc   :  { %1123 = vmatpush3.msra.mxu1 %v1281_v2  ;;  %1130 = vmatprep.mubr.msk.f32.mxu1 %vm1246_vm0, %v1245_v0 }
 0x2bd   :  { %1124 = vmatprep.subr.mxu1 %v1245_v0 }
 0x2be   :  { %1125 = vmatpush3.msra.mxu1 %v1292_v4 }
 0x2bf   :  { %1126 = vmatprep.subr.mxu1 %v1245_v0 }
 0x2c0   :  { %1127 = vmatpush3.msra.mxu1 %v1305_v7 }
 0x2c1   :  { %1128 = vmatprep.subr.mxu1 %v1245_v0 }
 0x2c2   :  { %1129 = vmatpush3.msra.mxu1 %v1313_v8 }
 0x2c3   :  { %1144 = vmatprep.subr.mxu1 %v1245_v0 }
 0x37b   :  { %v349_v31 = vpop.f32.mrf.mxu1 }
 0x37c   :  { %v353_v32 = vadd.f32 %v349_v31, %v131_v30 }
 0x37d   :  { %v1110_v33 = vpop.f32.mrf.mxu1 }
 0x37e   :  { %1189 = vtanh.f32 %v353_v32  ;;  %v1010_v35 = vmul.f32 -1.442695, %v353_v32 }
 0x380   :  { %1191 = vpow2.f32 %v1010_v35 }
 0x38b   :  { %v1190_v34 = vpop.eup %1189 }
 0x38c   :  { %363 = vrot.lane.b32.xlu0 %v1190_v34, %s1247_s5 }
 0x38d   :  { %v1192_v36 = vpop.eup %1191 }
 0x38e   :  { %v357_v37 = vadd.f32 1.0, %v1192_v36 }
 0x390   :  { %1193 = vrcp.f32 %v357_v37 }
 0x39d   :  { %v1194_v38 = vpop.eup %1193 }
 0x39e   :  { %v361_v41 = vmul.f32 %v1194_v38, %v269_v25 }
 0x3fe   :  { %v364_v39 = vpop.permute.xlu0 %363 }
 0x3ff   :  { %v366_v40 = vmul.f32 %v1194_v38, %v364_v39 }
 0x401   :  { %368 = vrot.lane.b32.xlu1 %v366_v40, %s1248_s3 }
 0x473   :  { %v369_v42 = vpop.permute.xlu1 %368 }
 0x474   :  { %v371_v43 = vadd.f32 %v369_v42, %v361_v41 }
 0x476   :  { %1195 = vtanh.f32 %v371_v43 }
 0x483   :  { %v1196_v50 = vpop.eup %1195 }
 0x484   :  { %374 = vrot.lane.b32.xlu0 %v1196_v50, %s1247_s5 }
 0x4f6   :  { %v375_v51 = vpop.permute.xlu0 %374 }
 0x4f7   :  { %v377_v52 = vmul.f32 %v1194_v38, %v375_v51  ;;  %v146_v38 = vadd.f32 %v1342_v10, %v1404_v57  ;;  %v151_v57 = vadd.f32 %v1402_v56, %v1342_v10 }
 0x4f9   :  { %381 = vrot.lane.b32.xlu1 %v377_v52, %s1248_s3 }
 0x56b   :  { %v382_v53 = vpop.permute.xlu1 %381 }
 0x56c   :  { %1120 = vmatmul.mubr.msk.f32.vlgmr.msra.gmra.mxu0 %vm177_vm2, %v382_v53 }
 0x56d   :  { %1134 = vmatpush3.msra.mxu0 %v1281_v2  ;;  %1141 = vmatprep.mubr.msk.f32.mxu0 %vm1246_vm0, %v1245_v0 }
 0x56e   :  { %1135 = vmatprep.subr.mxu0 %v1245_v0 }
 0x56f   :  { %1136 = vmatpush3.msra.mxu0 %v1292_v4 }
 0x570   :  { %1137 = vmatprep.subr.mxu0 %v1245_v0 }
 0x571   :  { %1138 = vmatpush3.msra.mxu0 %v1305_v7 }
 0x572   :  { %1139 = vmatprep.subr.mxu0 %v1245_v0 }
 0x573   :  { %1140 = vmatpush3.msra.mxu0 %v1313_v8 }
 0x574   :  { %1155 = vmatprep.subr.mxu0 %v1245_v0 }
 0x62c   :  { %v451_v61 = vpop.f32.mrf.mxu0 }
 0x62d   :  { %v455_v62 = vadd.f32 %v451_v61, %v136_v60 }
 0x62e   :  { %v1121_v63 = vpop.f32.mrf.mxu0 }
 0x62f   :  { %1197 = vtanh.f32 %v455_v62  ;;  %v1012_v3 = vmul.f32 -1.442695, %v455_v62 }
 0x631   :  { %1199 = vpow2.f32 %v1012_v3 }
 0x63c   :  { %v1198_v1 = vpop.eup %1197 }
 0x63d   :  { %465 = vrot.lane.b32.xlu0 %v1198_v1, %s1247_s5 }
 0x63e   :  { %v1200_v5 = vpop.eup %1199 }
 0x63f   :  { %v459_v6 = vadd.f32 1.0, %v1200_v5 }
 0x641   :  { %1201 = vrcp.f32 %v459_v6 }
 0x64e   :  { %v1202_v9 = vpop.eup %1201 }
 0x64f   :  { %v463_v13 = vmul.f32 %v1202_v9, %v371_v43 }
 0x6af   :  { %v466_v11 = vpop.permute.xlu0 %465 }
 0x6b0   :  { %v468_v12 = vmul.f32 %v1202_v9, %v466_v11 }
 0x6b2   :  { %470 = vrot.lane.b32.xlu1 %v468_v12, %s1248_s3 }
 0x724   :  { %v471_v14 = vpop.permute.xlu1 %470 }
 0x725   :  { %v473_v15 = vadd.f32 %v471_v14, %v463_v13  ;;  %v156_v13 = vadd.f32 %v1342_v10, %v1408_v59 }
 0x727   :  { %1203 = vtanh.f32 %v473_v15 }
 0x734   :  { %v1204_v16 = vpop.eup %1203 }
 0x735   :  { %476 = vrot.lane.b32.xlu0 %v1204_v16, %s1247_s5 }
 0x7a7   :  { %v477_v17 = vpop.permute.xlu0 %476 }
 0x7a8   :  { %v479_v18 = vmul.f32 %v1202_v9, %v477_v17 }
 0x7aa   :  { %483 = vrot.lane.b32.xlu1 %v479_v18, %s1248_s3 }
 0x81c   :  { %v484_v19 = vpop.permute.xlu1 %483 }
 0x81d   :  { %1131 = vmatmul.mubr.msk.f32.vlgmr.msra.gmra.mxu1 %vm177_vm2, %v484_v19 }
 0x81e   :  { %1145 = vmatpush3.msra.mxu1 %v1281_v2  ;;  %1152 = vmatprep.mubr.msk.f32.mxu1 %vm1246_vm0, %v1245_v0 }
 0x81f   :  { %1146 = vmatprep.subr.mxu1 %v1245_v0 }
 0x820   :  { %1147 = vmatpush3.msra.mxu1 %v1292_v4 }
 0x821   :  { %1148 = vmatprep.subr.mxu1 %v1245_v0 }
 0x822   :  { %1149 = vmatpush3.msra.mxu1 %v1305_v7 }
 0x823   :  { %1150 = vmatprep.subr.mxu1 %v1245_v0 }
 0x824   :  { %1151 = vmatpush3.msra.mxu1 %v1313_v8 }
 0x825   :  { %1166 = vmatprep.subr.mxu1 %v1245_v0 }
 0x8dd   :  { %v553_v21 = vpop.f32.mrf.mxu1 }
 0x8de   :  { %v557_v22 = vadd.f32 %v553_v21, %v141_v20 }
 0x8df   :  { %v1132_v23 = vpop.f32.mrf.mxu1 }
 0x8e0   :  { %1205 = vtanh.f32 %v557_v22  ;;  %v1014_v25 = vmul.f32 -1.442695, %v557_v22 }
 0x8e2   :  { %1207 = vpow2.f32 %v1014_v25 }
 0x8ed   :  { %v1206_v24 = vpop.eup %1205 }
 0x8ee   :  { %567 = vrot.lane.b32.xlu0 %v1206_v24, %s1247_s5 }
 0x8ef   :  { %v1208_v26 = vpop.eup %1207 }
 0x8f0   :  { %v561_v27 = vadd.f32 1.0, %v1208_v26 }
 0x8f2   :  { %1209 = vrcp.f32 %v561_v27 }
 0x8ff   :  { %v1210_v28 = vpop.eup %1209 }
 0x900   :  { %v565_v31 = vmul.f32 %v1210_v28, %v473_v15 }
 0x960   :  { %v568_v29 = vpop.permute.xlu0 %567 }
 0x961   :  { %v570_v30 = vmul.f32 %v1210_v28, %v568_v29 }
 0x963   :  { %572 = vrot.lane.b32.xlu1 %v570_v30, %s1248_s3  ;;  %v161_v30 = vadd.f32 %v1406_v58, %v1342_v10 }
 0x9d5   :  { %v573_v32 = vpop.permute.xlu1 %572 }
 0x9d6   :  { %v575_v33 = vadd.f32 %v573_v32, %v565_v31 }
 0x9d8   :  { %1211 = vtanh.f32 %v575_v33 }
 0x9e5   :  { %v1212_v34 = vpop.eup %1211 }
 0x9e6   :  { %578 = vrot.lane.b32.xlu0 %v1212_v34, %s1247_s5 }
 0xa58   :  { %v579_v35 = vpop.permute.xlu0 %578 }
 0xa59   :  { %v581_v36 = vmul.f32 %v1210_v28, %v579_v35 }
 0xa5b   :  { %585 = vrot.lane.b32.xlu1 %v581_v36, %s1248_s3 }
 0xacd   :  { %v586_v37 = vpop.permute.xlu1 %585 }
 0xace   :  { %1142 = vmatmul.mubr.msk.f32.vlgmr.msra.gmra.mxu0 %vm177_vm2, %v586_v37 }
 0xacf   :  { %1156 = vmatpush3.msra.mxu0 %v1281_v2  ;;  %1163 = vmatprep.mubr.msk.f32.mxu0 %vm1246_vm0, %v1245_v0 }
 0xad0   :  { %1157 = vmatprep.subr.mxu0 %v1245_v0 }
 0xad1   :  { %1158 = vmatpush3.msra.mxu0 %v1292_v4 }
 0xad2   :  { %1159 = vmatprep.subr.mxu0 %v1245_v0 }
 0xad3   :  { %1160 = vmatpush3.msra.mxu0 %v1305_v7 }
 0xad4   :  { %1161 = vmatprep.subr.mxu0 %v1245_v0 }
 0xad5   :  { %1162 = vmatpush3.msra.mxu0 %v1313_v8 }
 0xb8e   :  { %v655_v39 = vpop.f32.mrf.mxu0 }
 0xb8f   :  { %v659_v40 = vadd.f32 %v655_v39, %v146_v38 }
 0xb90   :  { %v1143_v41 = vpop.f32.mrf.mxu0 }
 0xb91   :  { %1213 = vtanh.f32 %v659_v40  ;;  %v1016_v43 = vmul.f32 -1.442695, %v659_v40 }
 0xb93   :  { %1215 = vpow2.f32 %v1016_v43 }
 0xb9e   :  { %v1214_v42 = vpop.eup %1213 }
 0xb9f   :  { %669 = vrot.lane.b32.xlu0 %v1214_v42, %s1247_s5 }
 0xba0   :  { %v1216_v44 = vpop.eup %1215 }
 0xba1   :  { %v663_v45 = vadd.f32 1.0, %v1216_v44 }
 0xba3   :  { %1217 = vrcp.f32 %v663_v45 }
 0xbb0   :  { %v1218_v46 = vpop.eup %1217 }
 0xbb1   :  { %v667_v49 = vmul.f32 %v1218_v46, %v575_v33 }
 0xc11   :  { %v670_v47 = vpop.permute.xlu0 %669 }
 0xc12   :  { %v672_v48 = vmul.f32 %v1218_v46, %v670_v47 }
 0xc14   :  { %674 = vrot.lane.b32.xlu1 %v672_v48, %s1248_s3 }
 0xc86   :  { %v675_v50 = vpop.permute.xlu1 %674 }
 0xc87   :  { %v677_v51 = vadd.f32 %v675_v50, %v667_v49 }
 0xc89   :  { %1219 = vtanh.f32 %v677_v51 }
 0xc96   :  { %v1220_v52 = vpop.eup %1219 }
 0xc97   :  { %680 = vrot.lane.b32.xlu0 %v1220_v52, %s1247_s5 }
 0xd09   :  { %v681_v53 = vpop.permute.xlu0 %680 }
 0xd0a   :  { %v683_v54 = vmul.f32 %v1218_v46, %v681_v53 }
 0xd0c   :  { %687 = vrot.lane.b32.xlu1 %v683_v54, %s1248_s3 }
 0xd7e   :  { %v688_v55 = vpop.permute.xlu1 %687 }
 0xd7f   :  { %1153 = vmatmul.mubr.msk.f32.vlgmr.msra.gmra.mxu1 %vm177_vm2, %v688_v55 }
 0xd80   :  { %1167 = vmatpush3.msra.mxu1 %v1281_v2  ;;  %1174 = vmatprep.mubr.msk.f32.mxu1 %vm1246_vm0, %v1245_v0 }
 0xd81   :  { %1168 = vmatprep.subr.mxu1 %v1245_v0 }
 0xd82   :  { %1169 = vmatpush3.msra.mxu1 %v1292_v4 }
 0xd83   :  { %1170 = vmatprep.subr.mxu1 %v1245_v0 }
 0xd84   :  { %1171 = vmatpush3.msra.mxu1 %v1305_v7 }
 0xd85   :  { %1172 = vmatprep.subr.mxu1 %v1245_v0 }
 0xd86   :  { %1173 = vmatpush3.msra.mxu1 %v1313_v8 }
 0xe3f   :  { %v757_v60 = vpop.f32.mrf.mxu1 }
 0xe40   :  { %v761_v2 = vadd.f32 %v757_v60, %v151_v57 }
 0xe41   :  { %v1154_v61 = vpop.f32.mrf.mxu1 }
 0xe42   :  { %1221 = vtanh.f32 %v761_v2  ;;  %v1018_v63 = vmul.f32 -1.442695, %v761_v2 }
 0xe44   :  { %1223 = vpow2.f32 %v1018_v63 }
 0xe4f   :  { %v1222_v62 = vpop.eup %1221 }
 0xe50   :  { %771 = vrot.lane.b32.xlu0 %v1222_v62, %s1247_s5 }
 0xe51   :  { %v1224_v4 = vpop.eup %1223 }
 0xe52   :  { %v765_v1 = vadd.f32 1.0, %v1224_v4 }
 0xe54   :  { %1225 = vrcp.f32 %v765_v1 }
 0xe61   :  { %v1226_v7 = vpop.eup %1225 }
 0xe62   :  { %v769_v8 = vmul.f32 %v1226_v7, %v677_v51 }
 0xec2   :  { %v772_v3 = vpop.permute.xlu0 %771 }
 0xec3   :  { %v774_v0 = vmul.f32 %v1226_v7, %v772_v3 }
 0xec5   :  { %776 = vrot.lane.b32.xlu1 %v774_v0, %s1248_s3 }
 0xf37   :  { %v777_v5 = vpop.permute.xlu1 %776 }
 0xf38   :  { %v779_v56 = vadd.f32 %v777_v5, %v769_v8 }
 0xf3a   :  { %1227 = vtanh.f32 %v779_v56 }
 0xf47   :  { %v1228_v6 = vpop.eup %1227 }
 0xf48   :  { %782 = vrot.lane.b32.xlu0 %v1228_v6, %s1247_s5 }
 0xfba   :  { %v783_v9 = vpop.permute.xlu0 %782 }
 0xfbb   :  { %v785_v11 = vmul.f32 %v1226_v7, %v783_v9 }
 0xfbd   :  { %789 = vrot.lane.b32.xlu1 %v785_v11, %s1248_s3 }
0x102f   :  { %v790_v12 = vpop.permute.xlu1 %789 }
0x1030   :  { %1164 = vmatmul.mubr.msk.f32.vlgmr.msra.gmra.mxu0 %vm177_vm2, %v790_v12 }
0x10f0   :  { %v859_v14 = vpop.f32.mrf.mxu0 }
0x10f1   :  { %v863_v15 = vadd.f32 %v859_v14, %v156_v13 }
0x10f2   :  { %v1165_v16 = vpop.f32.mrf.mxu0 }
0x10f3   :  { %1229 = vtanh.f32 %v863_v15  ;;  %v1020_v18 = vmul.f32 -1.442695, %v863_v15 }
0x10f5   :  { %1231 = vpow2.f32 %v1020_v18 }
0x1100   :  { %v1230_v17 = vpop.eup %1229 }
0x1101   :  { %873 = vrot.lane.b32.xlu0 %v1230_v17, %s1247_s5 }
0x1102   :  { %v1232_v19 = vpop.eup %1231 }
0x1103   :  { %v867_v20 = vadd.f32 1.0, %v1232_v19 }
0x1105   :  { %1233 = vrcp.f32 %v867_v20 }
0x1112   :  { %v1234_v21 = vpop.eup %1233 }
0x1113   :  { %v871_v24 = vmul.f32 %v1234_v21, %v779_v56 }
0x1173   :  { %v874_v22 = vpop.permute.xlu0 %873 }
0x1174   :  { %v876_v23 = vmul.f32 %v1234_v21, %v874_v22 }
0x1176   :  { %878 = vrot.lane.b32.xlu1 %v876_v23, %s1248_s3 }
0x11e8   :  { %v879_v25 = vpop.permute.xlu1 %878 }
0x11e9   :  { %v881_v59 = vadd.f32 %v879_v25, %v871_v24 }
0x11eb   :  { %1235 = vtanh.f32 %v881_v59 }
0x11f8   :  { %v1236_v26 = vpop.eup %1235 }
0x11f9   :  { %884 = vrot.lane.b32.xlu0 %v1236_v26, %s1247_s5 }
0x126b   :  { %v885_v27 = vpop.permute.xlu0 %884 }
0x126c   :  { %v887_v28 = vmul.f32 %v1234_v21, %v885_v27 }
0x126e   :  { %891 = vrot.lane.b32.xlu1 %v887_v28, %s1248_s3 }
0x12e0   :  { %v892_v29 = vpop.permute.xlu1 %891 }
0x12e1   :  { %1175 = vmatmul.mubr.msk.f32.vlgmr.msra.gmra.mxu1 %vm177_vm2, %v892_v29 }
0x13a1   :  { %v961_v31 = vpop.f32.mrf.mxu1 }
0x13a2   :  { %v965_v32 = vadd.f32 %v961_v31, %v161_v30 }
0x13a3   :  { %v1176_v33 = vpop.f32.mrf.mxu1 }
0x13a4   :  { %1237 = vtanh.f32 %v965_v32  ;;  %v1022_v35 = vmul.f32 -1.442695, %v965_v32 }
0x13a6   :  { %1239 = vpow2.f32 %v1022_v35 }
0x13b1   :  { %v1238_v34 = vpop.eup %1237 }
0x13b2   :  { %975 = vrot.lane.b32.xlu0 %v1238_v34, %s1247_s5 }
0x13b3   :  { %v1240_v36 = vpop.eup %1239 }
0x13b4   :  { %v969_v37 = vadd.f32 1.0, %v1240_v36 }
0x13b6   :  { %1241 = vrcp.f32 %v969_v37 }
0x13c3   :  { %v1242_v38 = vpop.eup %1241 }
0x13c4   :  { %v973_v41 = vmul.f32 %v1242_v38, %v881_v59 }
0x1424   :  { %v976_v39 = vpop.permute.xlu0 %975 }
0x1425   :  { %v978_v40 = vmul.f32 %v1242_v38, %v976_v39 }
0x1427   :  { %980 = vrot.lane.b32.xlu1 %v978_v40, %s1248_s3 }
0x1499   :  { %v981_v42 = vpop.permute.xlu1 %980 }
0x149a   :  { %v983_v10 = vadd.f32 %v981_v42, %v973_v41 }
0x149c   :  { %1243 = vtanh.f32 %v983_v10 }
0x14a9   :  { %v1244_v58 = vpop.eup %1243 }
0x14aa   :  { %986 = vrot.lane.b32.xlu0 %v1244_v58, %s1247_s5 }
0x151c   :  { %v987_v43 = vpop.permute.xlu0 %986 }
0x151d   :  { %v989_v44 = vmul.f32 %v1242_v38, %v987_v43 }
0x151f   :  { %991 = vrot.lane.b32.xlu1 %v989_v44, %s1248_s3 }
0x1591   :  { %v992_v45 = vpop.permute.xlu1 %991 }
0x1592   :  { %994 = vst.msk [vmem:[%s1485_s4] sm:$0xff] %vm177_vm2, %v992_v45 }

</bundles_post_ra>
